<compile_context>
chip_gen: v6e
topology: v6e:2x2x1
jax: 0.10.0
libtpu: 0.0.40
codegen_flags: <defaults>
</compile_context>

<pallas_src>
import jax
import jax.numpy as jnp
from jax.experimental import pallas as pl
from jax.experimental.pallas import tpu as pltpu
from jax.scipy.special import erf as _jax_erf

_SQRT_HALF = 0.7071067811865476
_LANE = 128        # vreg lane width: internal hidden dim padded to this
_MIN_STEPS = 4     # aim for >= 4 grid steps so both v7x TensorCores get work


def _round_up(n, m):
    return ((n + m - 1) // m) * m


_BUDGET = None


def _budget():
    """(vmem_limit_bytes, row_tile_target) chosen per TPU generation."""
    global _BUDGET
    if _BUDGET is None:
        try:
            vmem = int(pltpu.get_tpu_info().vmem_capacity_bytes)
        except Exception:
            vmem = 64 * 1024 * 1024            # conservative (v7x-sized) fallback
        if vmem >= 96 * 1024 * 1024:           # v5e / v6e: 128 MiB VMEM
            _BUDGET = (96 * 1024 * 1024, 2048)
        else:                                  # v7x: 64 MiB VMEM, leave headroom
            _BUDGET = (40 * 1024 * 1024, 1024)
    return _BUDGET


def _pick_tm(m):
    """Fixed-target row tile (multiple of 8); grid uses pl.cdiv(M, tm).

    The tile is only shrunk so small/medium M still gets ~_MIN_STEPS grid steps
    (v7x has two TensorCores); large M uses the full generation-aware target.
    Partial last blocks are masked by Pallas -- rows are independent, so the
    padded garbage rows are never stored.
    """
    target = _budget()[1]
    want = _round_up(pl.cdiv(m, _MIN_STEPS), 8)
    return max(8, min(target, want))


def _cp():
    return pltpu.CompilerParams(
        dimension_semantics=("parallel",),
        vmem_limit_bytes=_budget()[0],
    )


def _erf(x):
    # exact erf has no Mosaic lowering -> numerical-recipes erfc approximation
    # (|err| < 1.2e-7), built from exp / mul / add which all lower on TPU.
    # TODO(synk): pl.reciprocal(approx=True) here needs an accuracy re-check vs
    #             the 2e-3 end-to-end tolerance before enabling (review note).
    a = jnp.abs(x)
    t = 1.0 / (1.0 + 0.5 * a)
    poly = -1.26551223 + t * (1.00002368 + t * (0.37409196 + t * (0.09678418 +
           t * (-0.18628806 + t * (0.27886807 + t * (-1.13520398 + t * (1.48851587 +
           t * (-0.82215223 + t * 0.17087277))))))))
    erfc_a = t * jnp.exp(-a * a + poly)
    erf_a = 1.0 - erfc_a
    return jnp.where(x >= 0, erf_a, -erf_a)


def _gelu_exact(x):
    # nn.GELU() default = exact (erf) formulation, not tanh approximation.
    return 0.5 * x * (1.0 + _erf(x * _SQRT_HALF))


# ----------------------------- Pallas kernels -----------------------------

def _feedforward_kernel(x_ref, w1_ref, b1_ref, w2_ref, b2_ref, o_ref):
    # out = Linear2( Tanh( Linear1(x) ) ); dropout = identity (eval mode).
    h = jnp.tanh(jnp.dot(x_ref[...], w1_ref[...],
                         preferred_element_type=jnp.float32) + b1_ref[...])
    o_ref[...] = jnp.dot(h, w2_ref[...],
                         preferred_element_type=jnp.float32) + b2_ref[...]


def _spectral_matmul_kernel(f_ref, r_ref, o_ref):
    # Realified complex matmul: [Fr | Fi] @ [[Rr, Ri], [-Ri, Rr]] = [real | imag]
    # One dense MXU pass, no VALU combine passes, no large-term cancellation.
    o_ref[...] = jnp.dot(f_ref[...], r_ref[...],
                         preferred_element_type=jnp.float32)


def _linear_add_gelu_kernel(x_ref, w_ref, b_ref, vf_ref, o_ref):
    # gelu( Linear(x) + v_fourier )
    vl = jnp.dot(x_ref[...], w_ref[...],
                 preferred_element_type=jnp.float32) + b_ref[...]
    o_ref[...] = _gelu_exact(vl + vf_ref[...])


# ------------------------------- wrappers ----------------------------------

def feedforward(x2d, w1, b1, w2, b2):
    M, din = x2d.shape
    units = w1.shape[1]
    dout = w2.shape[1]
    up = _round_up(units, _LANE)     # hidden 100 -> 128 (zero-pad: exact, stays in VMEM)
    w1p = jnp.pad(w1, ((0, 0), (0, up - units)))
    b1p = jnp.pad(b1.reshape(1, units), ((0, 0), (0, up - units)))
    w2p = jnp.pad(w2, ((0, up - units), (0, 0)))
    b2p = b2.reshape(1, dout)
    tm = _pick_tm(M)
    cost = pl.CostEstimate(
        flops=2 * M * (din * up + up * dout),
        transcendentals=M * up,
        bytes_accessed=4 * (M * din + din * up + up + up * dout + dout + M * dout),
    )
    return pl.pallas_call(
        _feedforward_kernel,
        out_shape=jax.ShapeDtypeStruct((M, dout), jnp.float32),
        grid=(pl.cdiv(M, tm),),
        in_specs=[
            pl.BlockSpec((tm, din), lambda i: (i, 0)),
            pl.BlockSpec((din, up), lambda i: (0, 0)),
            pl.BlockSpec((1, up), lambda i: (0, 0)),
            pl.BlockSpec((up, dout), lambda i: (0, 0)),
            pl.BlockSpec((1, dout), lambda i: (0, 0)),
        ],
        out_specs=pl.BlockSpec((tm, dout), lambda i: (i, 0)),
        compiler_params=_cp(),
        cost_estimate=cost,
    )(x2d, w1p, b1p, w2p, b2p)


def spectral_matmul(fri, r2):
    """[Fr | Fi] (M, 2C)  @  realified RHS (2C, 2*cf)  ->  [real | imag] (M, 2*cf)."""
    M, K = fri.shape
    N = r2.shape[1]
    tm = _pick_tm(M)
    cost = pl.CostEstimate(
        flops=2 * M * K * N,
        transcendentals=0,
        bytes_accessed=4 * (M * K + K * N + M * N),
    )
    return pl.pallas_call(
        _spectral_matmul_kernel,
        out_shape=jax.ShapeDtypeStruct((M, N), jnp.float32),
        grid=(pl.cdiv(M, tm),),
        in_specs=[
            pl.BlockSpec((tm, K), lambda i: (i, 0)),
            pl.BlockSpec((K, N), lambda i: (0, 0)),
        ],
        out_specs=pl.BlockSpec((tm, N), lambda i: (i, 0)),
        compiler_params=_cp(),
        cost_estimate=cost,
    )(fri, r2)


def linear_add_gelu(x2d, w, b, vf2d):
    M, C = x2d.shape
    co = w.shape[1]
    bp = b.reshape(1, co)
    tm = _pick_tm(M)
    cost = pl.CostEstimate(
        flops=2 * M * C * co + 25 * M * co,
        transcendentals=2 * M * co,
        bytes_accessed=4 * (M * C + C * co + co + M * co + M * co),
    )
    return pl.pallas_call(
        _linear_add_gelu_kernel,
        out_shape=jax.ShapeDtypeStruct((M, co), jnp.float32),
        grid=(pl.cdiv(M, tm),),
        in_specs=[
            pl.BlockSpec((tm, C), lambda i: (i, 0)),
            pl.BlockSpec((C, co), lambda i: (0, 0)),
            pl.BlockSpec((1, co), lambda i: (0, 0)),
            pl.BlockSpec((tm, co), lambda i: (i, 0)),
        ],
        out_specs=pl.BlockSpec((tm, co), lambda i: (i, 0)),
        compiler_params=_cp(),
        cost_estimate=cost,
    )(x2d, w, bp, vf2d)


# ------------------------------ FNO forward ---------------------------------

def fourier_block(x, params):
    # x: (B, S, C) real float32, channels-last
    B, S, C = x.shape
    M = B * S
    Rr, Ri, W, b = params
    cf = C // 2 + 1
    # spectral branch: torch.fft.fftn(x) with no dims -> FFT over ALL axes.
    # TODO(synk): fftn/irfftn stay in plain jnp.fft (no Pallas TPU FFT primitive).
    Fv = jnp.fft.fftn(x)
    fri = jnp.concatenate(
        [jnp.real(Fv).astype(jnp.float32), jnp.imag(Fv).astype(jnp.float32)],
        axis=-1).reshape(M, 2 * C)
    # Realified RHS with the irfftn crop applied to the columns: only the first
    # cf = C//2+1 output columns are read by irfftn(..., s=(B,S,C)), so only
    # those are computed (exactly equivalent to the full torch matmul + crop).
    R2 = jnp.concatenate([
        jnp.concatenate([Rr[:, :cf], Ri[:, :cf]], axis=1),
        jnp.concatenate([-Ri[:, :cf], Rr[:, :cf]], axis=1),
    ], axis=0)                                             # (2C, 2*cf)
    ri_out = spectral_matmul(fri, R2)                      # (M, 2*cf) = [real | imag]
    RFv_half = jax.lax.complex(ri_out[:, :cf], ri_out[:, cf:]).reshape(B, S, cf)
    # torch.fft.irfftn(RFv, x.size()): inverse real FFT back to the input shape.
    v_f = jnp.fft.irfftn(RFv_half, s=(B, S, C)).astype(jnp.float32)
    out2d = linear_add_gelu(x.reshape(M, C), W, b, v_f.reshape(M, C))
    return out2d.reshape(B, S, C)


def fno_layer(x, params):
    B, S, da = x.shape
    M = B * S
    v = feedforward(x.reshape(M, da), *params["P"])        # P : da -> dv
    dv = v.shape[-1]
    h = v.reshape(B, S, dv)
    h = fourier_block(h, params["four1"])                   # drop1 = identity (eval)
    h = fourier_block(h, params["four2"])                   # drop2 = identity (eval)
    h = fourier_block(h, params["four3"])                   # drop3 = identity (eval)
    u = feedforward(h.reshape(M, dv), *params["Q"])         # Q : dv -> du
    return u.reshape(B, S, -1)


# --------------------------- params & reference ------------------------------

def init_params(key, da, du, dv, units=100):
    ks = jax.random.split(key, 5)

    def lin(k, fan_in, fan_out):
        k1, k2 = jax.random.split(k)
        bound = 1.0 / jnp.sqrt(jnp.float32(fan_in))
        w = jax.random.uniform(k1, (fan_in, fan_out), jnp.float32, -bound, bound)
        b = jax.random.uniform(k2, (fan_out,), jnp.float32, -bound, bound)
        return w, b

    def ff(k, din, dout):
        k1, k2 = jax.random.split(k)
        w1, b1 = lin(k1, din, units)
        w2, b2 = lin(k2, units, dout)
        return (w1, b1, w2, b2)

    def fblock(k, c):
        k1, k2, k3 = jax.random.split(k, 3)
        # torch.rand(in, out, dtype=cfloat): real & imag ~ U[0, 1)
        Rr = jax.random.uniform(k1, (c, c), jnp.float32)
        Ri = jax.random.uniform(k2, (c, c), jnp.float32)
        W, b = lin(k3, c, c)
        return (Rr, Ri, W, b)

    return {
        "P": ff(ks[0], da, dv),
        "Q": ff(ks[1], dv, du),
        "four1": fblock(ks[2], dv),
        "four2": fblock(ks[3], dv),
        "four3": fblock(ks[4], dv),
    }


def fno_ref(x, params):
    # pure-JAX reference mirroring the PyTorch forward (dropouts = identity,
    # full-width spectral matmul, exact-erf GELU).
    def ff(h, p):
        w1, b1, w2, b2 = p
        return jnp.tanh(h @ w1 + b1) @ w2 + b2

    def fblock(h, p):
        Rr, Ri, W, b = p
        R = (Rr + 1j * Ri).astype(jnp.complex64)
        Fv = jnp.fft.fftn(h)
        RFv = jnp.matmul(Fv, R)
        v_f = jnp.fft.irfftn(RFv, s=h.shape)
        z = h @ W + b + v_f
        return 0.5 * z * (1.0 + _jax_erf(z * _SQRT_HALF))

    v = ff(x, params["P"])
    h = fblock(v, params["four1"])
    h = fblock(h, params["four2"])
    h = fblock(h, params["four3"])
    return ff(h, params["Q"])


if __name__ == "__main__":
    key = jax.random.PRNGKey(0)
    kp, kx = jax.random.split(key)
    # M = B*S = 60 is deliberately NOT a multiple of the chosen row tile, so the
    # multi-step grid AND the masked partial-last-block path are both exercised
    # (review correctness concern #2).
    B, S = 2, 30
    da, du, dv = 4, 4, 8

    params = init_params(kp, da, du, dv)
    x = jax.random.normal(kx, (B, S, da), jnp.float32)

    out = jax.jit(fno_layer)(x, params)
    out = jax.block_until_ready(out)

    ref = fno_ref(x, params)
    assert out.shape == (B, S, du), out.shape
    max_err = float(jnp.max(jnp.abs(out - ref)))
    assert max_err < 2e-3, f"max abs error vs reference: {max_err}"
    print("KERNEL_OK")
</pallas_src>

<mosaic_0001>
module attributes {stable_mosaic.version = 11 : i64} {
  func.func @_feedforward_kernel(%arg0: i32, %arg1: memref<16x4xf32, #tpu.memory_space<vmem>>, %arg2: memref<4x128xf32, #tpu.memory_space<vmem>>, %arg3: memref<1x128xf32, #tpu.memory_space<vmem>>, %arg4: memref<128x8xf32, #tpu.memory_space<vmem>>, %arg5: memref<1x8xf32, #tpu.memory_space<vmem>>, %arg6: memref<16x8xf32, #tpu.memory_space<vmem>>) attributes {dimension_semantics = [#tpu.dimension_semantics<parallel>], iteration_bounds = array<i64: 4>, scalar_prefetch = 0 : i64, scratch_operands = 0 : i64, tpu.core_type = #tpu.core_type<tc>, window_params = [{transform_indices = @transform_0, window_bounds = array<i64: 16, 4>}, {pipeline_mode = #tpu.pipeline_mode<synchronous>, transform_indices = @transform_1, window_bounds = array<i64: 4, 128>}, {pipeline_mode = #tpu.pipeline_mode<synchronous>, transform_indices = @transform_2, window_bounds = array<i64: 1, 128>}, {pipeline_mode = #tpu.pipeline_mode<synchronous>, transform_indices = @transform_3, window_bounds = array<i64: 128, 8>}, {pipeline_mode = #tpu.pipeline_mode<synchronous>, transform_indices = @transform_4, window_bounds = array<i64: 1, 8>}, {transform_indices = @transform_5, window_bounds = array<i64: 16, 8>}]} {
    %c0 = arith.constant 0 : index
    %c0_0 = arith.constant 0 : index
    %0 = vector.load %arg1[%c0, %c0_0] : memref<16x4xf32, #tpu.memory_space<vmem>>, vector<16x4xf32>
    %c0_1 = arith.constant 0 : index
    %c0_2 = arith.constant 0 : index
    %1 = vector.load %arg2[%c0_1, %c0_2] : memref<4x128xf32, #tpu.memory_space<vmem>>, vector<4x128xf32>
    %cst = arith.constant dense<0.000000e+00> : vector<16x128xf32>
    %2 = tpu.matmul %0, %1, %cst {dimension_numbers = #tpu.dot_dimension_numbers<[1], [0], [0], [1], [0, 0, 1, 1], [], []>} : vector<16x4xf32>, vector<4x128xf32>, vector<16x128xf32> -> vector<16x128xf32>
    %c0_3 = arith.constant 0 : index
    %c0_4 = arith.constant 0 : index
    %3 = vector.load %arg3[%c0_3, %c0_4] : memref<1x128xf32, #tpu.memory_space<vmem>>, vector<1x128xf32>
    %4 = vector.broadcast %3 : vector<1x128xf32> to vector<16x128xf32>
    %5 = arith.addf %2, %4 : vector<16x128xf32>
    %6 = math.tanh %5 : vector<16x128xf32>
    %c0_5 = arith.constant 0 : index
    %c0_6 = arith.constant 0 : index
    %7 = vector.load %arg4[%c0_5, %c0_6] : memref<128x8xf32, #tpu.memory_space<vmem>>, vector<128x8xf32>
    %cst_7 = arith.constant dense<0.000000e+00> : vector<16x8xf32>
    %8 = tpu.matmul %6, %7, %cst_7 {dimension_numbers = #tpu.dot_dimension_numbers<[1], [0], [0], [1], [0, 0, 1, 1], [], []>} : vector<16x128xf32>, vector<128x8xf32>, vector<16x8xf32> -> vector<16x8xf32>
    %c0_8 = arith.constant 0 : index
    %c0_9 = arith.constant 0 : index
    %9 = vector.load %arg5[%c0_8, %c0_9] : memref<1x8xf32, #tpu.memory_space<vmem>>, vector<1x8xf32>
    %10 = vector.broadcast %9 : vector<1x8xf32> to vector<16x8xf32>
    %11 = arith.addf %8, %10 : vector<16x8xf32>
    %c0_10 = arith.constant 0 : index
    %c0_11 = arith.constant 0 : index
    %12 = vector.load %arg6[%c0_10, %c0_11] : memref<16x8xf32, #tpu.memory_space<vmem>>, vector<16x8xf32>
    tpu.vector_store %arg6[%c0_10, %c0_11], %11 {strides = array<i32>} : memref<16x8xf32, #tpu.memory_space<vmem>>, vector<16x8xf32>,
    return
  }
  func.func @transform_0(%arg0: i32) -> (i32, i32) {
    %c0_i32 = arith.constant 0 : i32
    %c0_i32_0 = arith.constant 0 : i32
    return %arg0, %c0_i32 : i32, i32
  }
  func.func @transform_1(%arg0: i32) -> (i32, i32) {
    %c0_i32 = arith.constant 0 : i32
    %c0_i32_0 = arith.constant 0 : i32
    %c0_i32_1 = arith.constant 0 : i32
    return %c0_i32, %c0_i32_0 : i32, i32
  }
  func.func @transform_2(%arg0: i32) -> (i32, i32) {
    %c0_i32 = arith.constant 0 : i32
    %c0_i32_0 = arith.constant 0 : i32
    %c0_i32_1 = arith.constant 0 : i32
    return %c0_i32, %c0_i32_0 : i32, i32
  }
  func.func @transform_3(%arg0: i32) -> (i32, i32) {
    %c0_i32 = arith.constant 0 : i32
    %c0_i32_0 = arith.constant 0 : i32
    %c0_i32_1 = arith.constant 0 : i32
    return %c0_i32, %c0_i32_0 : i32, i32
  }
  func.func @transform_4(%arg0: i32) -> (i32, i32) {
    %c0_i32 = arith.constant 0 : i32
    %c0_i32_0 = arith.constant 0 : i32
    %c0_i32_1 = arith.constant 0 : i32
    return %c0_i32, %c0_i32_0 : i32, i32
  }
  func.func @transform_5(%arg0: i32) -> (i32, i32) {
    %c0_i32 = arith.constant 0 : i32
    %c0_i32_0 = arith.constant 0 : i32
    return %arg0, %c0_i32 : i32, i32
  }
}

module attributes {stable_mosaic.version = 11 : i64} {
  func.func @_spectral_matmul_kernel(%arg0: i32, %arg1: memref<16x16xf32, #tpu.memory_space<vmem>>, %arg2: memref<16x10xf32, #tpu.memory_space<vmem>>, %arg3: memref<16x10xf32, #tpu.memory_space<vmem>>) attributes {dimension_semantics = [#tpu.dimension_semantics<parallel>], iteration_bounds = array<i64: 4>, scalar_prefetch = 0 : i64, scratch_operands = 0 : i64, tpu.core_type = #tpu.core_type<tc>, window_params = [{transform_indices = @transform_0, window_bounds = array<i64: 16, 16>}, {pipeline_mode = #tpu.pipeline_mode<synchronous>, transform_indices = @transform_1, window_bounds = array<i64: 16, 10>}, {transform_indices = @transform_2, window_bounds = array<i64: 16, 10>}]} {
    %c0 = arith.constant 0 : index
    %c0_0 = arith.constant 0 : index
    %0 = vector.load %arg1[%c0, %c0_0] : memref<16x16xf32, #tpu.memory_space<vmem>>, vector<16x16xf32>
    %c0_1 = arith.constant 0 : index
    %c0_2 = arith.constant 0 : index
    %1 = vector.load %arg2[%c0_1, %c0_2] : memref<16x10xf32, #tpu.memory_space<vmem>>, vector<16x10xf32>
    %cst = arith.constant dense<0.000000e+00> : vector<16x10xf32>
    %2 = tpu.matmul %0, %1, %cst {dimension_numbers = #tpu.dot_dimension_numbers<[1], [0], [0], [1], [0, 0, 1, 1], [], []>} : vector<16x16xf32>, vector<16x10xf32>, vector<16x10xf32> -> vector<16x10xf32>
    %c0_3 = arith.constant 0 : index
    %c0_4 = arith.constant 0 : index
    %3 = vector.load %arg3[%c0_3, %c0_4] : memref<16x10xf32, #tpu.memory_space<vmem>>, vector<16x10xf32>
    tpu.vector_store %arg3[%c0_3, %c0_4], %2 {strides = array<i32>} : memref<16x10xf32, #tpu.memory_space<vmem>>, vector<16x10xf32>,
    return
  }
  func.func @transform_0(%arg0: i32) -> (i32, i32) {
    %c0_i32 = arith.constant 0 : i32
    %c0_i32_0 = arith.constant 0 : i32
    return %arg0, %c0_i32 : i32, i32
  }
  func.func @transform_1(%arg0: i32) -> (i32, i32) {
    %c0_i32 = arith.constant 0 : i32
    %c0_i32_0 = arith.constant 0 : i32
    %c0_i32_1 = arith.constant 0 : i32
    return %c0_i32, %c0_i32_0 : i32, i32
  }
  func.func @transform_2(%arg0: i32) -> (i32, i32) {
    %c0_i32 = arith.constant 0 : i32
    %c0_i32_0 = arith.constant 0 : i32
    return %arg0, %c0_i32 : i32, i32
  }
}

module attributes {stable_mosaic.version = 11 : i64} {
  func.func @_linear_add_gelu_kernel(%arg0: i32, %arg1: memref<16x8xf32, #tpu.memory_space<vmem>>, %arg2: memref<8x8xf32, #tpu.memory_space<vmem>>, %arg3: memref<1x8xf32, #tpu.memory_space<vmem>>, %arg4: memref<16x8xf32, #tpu.memory_space<vmem>>, %arg5: memref<16x8xf32, #tpu.memory_space<vmem>>) attributes {dimension_semantics = [#tpu.dimension_semantics<parallel>], iteration_bounds = array<i64: 4>, scalar_prefetch = 0 : i64, scratch_operands = 0 : i64, tpu.core_type = #tpu.core_type<tc>, window_params = [{transform_indices = @transform_0, window_bounds = array<i64: 16, 8>}, {pipeline_mode = #tpu.pipeline_mode<synchronous>, transform_indices = @transform_1, window_bounds = array<i64: 8, 8>}, {pipeline_mode = #tpu.pipeline_mode<synchronous>, transform_indices = @transform_2, window_bounds = array<i64: 1, 8>}, {transform_indices = @transform_3, window_bounds = array<i64: 16, 8>}, {transform_indices = @transform_4, window_bounds = array<i64: 16, 8>}]} {
    %c0 = arith.constant 0 : index
    %c0_0 = arith.constant 0 : index
    %0 = vector.load %arg1[%c0, %c0_0] : memref<16x8xf32, #tpu.memory_space<vmem>>, vector<16x8xf32>
    %c0_1 = arith.constant 0 : index
    %c0_2 = arith.constant 0 : index
    %1 = vector.load %arg2[%c0_1, %c0_2] : memref<8x8xf32, #tpu.memory_space<vmem>>, vector<8x8xf32>
    %cst = arith.constant dense<0.000000e+00> : vector<16x8xf32>
    %2 = tpu.matmul %0, %1, %cst {dimension_numbers = #tpu.dot_dimension_numbers<[1], [0], [0], [1], [0, 0, 1, 1], [], []>} : vector<16x8xf32>, vector<8x8xf32>, vector<16x8xf32> -> vector<16x8xf32>
    %c0_3 = arith.constant 0 : index
    %c0_4 = arith.constant 0 : index
    %3 = vector.load %arg3[%c0_3, %c0_4] : memref<1x8xf32, #tpu.memory_space<vmem>>, vector<1x8xf32>
    %4 = vector.broadcast %3 : vector<1x8xf32> to vector<16x8xf32>
    %5 = arith.addf %2, %4 : vector<16x8xf32>
    %c0_5 = arith.constant 0 : index
    %c0_6 = arith.constant 0 : index
    %6 = vector.load %arg4[%c0_5, %c0_6] : memref<16x8xf32, #tpu.memory_space<vmem>>, vector<16x8xf32>
    %7 = arith.addf %5, %6 : vector<16x8xf32>
    %cst_7 = arith.constant 5.000000e-01 : f32
    %8 = vector.broadcast %cst_7 : f32 to vector<16x8xf32>
    %9 = arith.mulf %8, %7 : vector<16x8xf32>
    %cst_8 = arith.constant 0.707106769 : f32
    %10 = vector.broadcast %cst_8 : f32 to vector<16x8xf32>
    %11 = arith.mulf %7, %10 : vector<16x8xf32>
    %12 = math.absf %11 : vector<16x8xf32>
    %cst_9 = arith.constant 5.000000e-01 : f32
    %13 = vector.broadcast %cst_9 : f32 to vector<16x8xf32>
    %14 = arith.mulf %13, %12 : vector<16x8xf32>
    %cst_10 = arith.constant 1.000000e+00 : f32
    %15 = vector.broadcast %cst_10 : f32 to vector<16x8xf32>
    %16 = arith.addf %15, %14 : vector<16x8xf32>
    %cst_11 = arith.constant 1.000000e+00 : f32
    %17 = vector.broadcast %cst_11 : f32 to vector<16x8xf32>
    %18 = arith.divf %17, %16 : vector<16x8xf32>
    %cst_12 = arith.constant 0.170872763 : f32
    %19 = vector.broadcast %cst_12 : f32 to vector<16x8xf32>
    %20 = arith.mulf %18, %19 : vector<16x8xf32>
    %cst_13 = arith.constant -0.822152256 : f32
    %21 = vector.broadcast %cst_13 : f32 to vector<16x8xf32>
    %22 = arith.addf %21, %20 : vector<16x8xf32>
    %23 = arith.mulf %18, %22 : vector<16x8xf32>
    %cst_14 = arith.constant 1.48851585 : f32
    %24 = vector.broadcast %cst_14 : f32 to vector<16x8xf32>
    %25 = arith.addf %24, %23 : vector<16x8xf32>
    %26 = arith.mulf %18, %25 : vector<16x8xf32>
    %cst_15 = arith.constant -1.13520396 : f32
    %27 = vector.broadcast %cst_15 : f32 to vector<16x8xf32>
    %28 = arith.addf %27, %26 : vector<16x8xf32>
    %29 = arith.mulf %18, %28 : vector<16x8xf32>
    %cst_16 = arith.constant 0.278868079 : f32
    %30 = vector.broadcast %cst_16 : f32 to vector<16x8xf32>
    %31 = arith.addf %30, %29 : vector<16x8xf32>
    %32 = arith.mulf %18, %31 : vector<16x8xf32>
    %cst_17 = arith.constant -0.186288059 : f32
    %33 = vector.broadcast %cst_17 : f32 to vector<16x8xf32>
    %34 = arith.addf %33, %32 : vector<16x8xf32>
    %35 = arith.mulf %18, %34 : vector<16x8xf32>
    %cst_18 = arith.constant 0.0967841818 : f32
    %36 = vector.broadcast %cst_18 : f32 to vector<16x8xf32>
    %37 = arith.addf %36, %35 : vector<16x8xf32>
    %38 = arith.mulf %18, %37 : vector<16x8xf32>
    %cst_19 = arith.constant 0.374091953 : f32
    %39 = vector.broadcast %cst_19 : f32 to vector<16x8xf32>
    %40 = arith.addf %39, %38 : vector<16x8xf32>
    %41 = arith.mulf %18, %40 : vector<16x8xf32>
    %cst_20 = arith.constant 1.00002372 : f32
    %42 = vector.broadcast %cst_20 : f32 to vector<16x8xf32>
    %43 = arith.addf %42, %41 : vector<16x8xf32>
    %44 = arith.mulf %18, %43 : vector<16x8xf32>
    %cst_21 = arith.constant -1.26551223 : f32
    %45 = vector.broadcast %cst_21 : f32 to vector<16x8xf32>
    %46 = arith.addf %45, %44 : vector<16x8xf32>
    %cst_22 = arith.constant 0.000000e+00 : f32
    %47 = vector.broadcast %cst_22 : f32 to vector<16x8xf32>
    %48 = arith.subf %47, %12 : vector<16x8xf32>
    %49 = arith.mulf %48, %12 : vector<16x8xf32>
    %50 = arith.addf %49, %46 : vector<16x8xf32>
    %51 = math.exp %50 : vector<16x8xf32>
    %52 = arith.mulf %18, %51 : vector<16x8xf32>
    %cst_23 = arith.constant 1.000000e+00 : f32
    %53 = vector.broadcast %cst_23 : f32 to vector<16x8xf32>
    %54 = arith.subf %53, %52 : vector<16x8xf32>
    %cst_24 = arith.constant 0.000000e+00 : f32
    %55 = vector.broadcast %cst_24 : f32 to vector<16x8xf32>
    %56 = arith.cmpf oge, %11, %55 : vector<16x8xf32>
    %cst_25 = arith.constant 0.000000e+00 : f32
    %57 = vector.broadcast %cst_25 : f32 to vector<16x8xf32>
    %58 = arith.subf %57, %54 : vector<16x8xf32>
    %59 = arith.select %56, %54, %58 : vector<16x8xi1>, vector<16x8xf32>
    %cst_26 = arith.constant 1.000000e+00 : f32
    %60 = vector.broadcast %cst_26 : f32 to vector<16x8xf32>
    %61 = arith.addf %60, %59 : vector<16x8xf32>
    %62 = arith.mulf %9, %61 : vector<16x8xf32>
    %c0_27 = arith.constant 0 : index
    %c0_28 = arith.constant 0 : index
    %63 = vector.load %arg5[%c0_27, %c0_28] : memref<16x8xf32, #tpu.memory_space<vmem>>, vector<16x8xf32>
    tpu.vector_store %arg5[%c0_27, %c0_28], %62 {strides = array<i32>} : memref<16x8xf32, #tpu.memory_space<vmem>>, vector<16x8xf32>,
    return
  }
  func.func @transform_0(%arg0: i32) -> (i32, i32) {
    %c0_i32 = arith.constant 0 : i32
    %c0_i32_0 = arith.constant 0 : i32
    return %arg0, %c0_i32 : i32, i32
  }
  func.func @transform_1(%arg0: i32) -> (i32, i32) {
    %c0_i32 = arith.constant 0 : i32
    %c0_i32_0 = arith.constant 0 : i32
    %c0_i32_1 = arith.constant 0 : i32
    return %c0_i32, %c0_i32_0 : i32, i32
  }
  func.func @transform_2(%arg0: i32) -> (i32, i32) {
    %c0_i32 = arith.constant 0 : i32
    %c0_i32_0 = arith.constant 0 : i32
    %c0_i32_1 = arith.constant 0 : i32
    return %c0_i32, %c0_i32_0 : i32, i32
  }
  func.func @transform_3(%arg0: i32) -> (i32, i32) {
    %c0_i32 = arith.constant 0 : i32
    %c0_i32_0 = arith.constant 0 : i32
    return %arg0, %c0_i32 : i32, i32
  }
  func.func @transform_4(%arg0: i32) -> (i32, i32) {
    %c0_i32 = arith.constant 0 : i32
    %c0_i32_0 = arith.constant 0 : i32
    return %arg0, %c0_i32 : i32, i32
  }
}

module attributes {stable_mosaic.version = 11 : i64} {
  func.func @_feedforward_kernel(%arg0: i32, %arg1: memref<16x8xf32, #tpu.memory_space<vmem>>, %arg2: memref<8x128xf32, #tpu.memory_space<vmem>>, %arg3: memref<1x128xf32, #tpu.memory_space<vmem>>, %arg4: memref<128x4xf32, #tpu.memory_space<vmem>>, %arg5: memref<1x4xf32, #tpu.memory_space<vmem>>, %arg6: memref<16x4xf32, #tpu.memory_space<vmem>>) attributes {dimension_semantics = [#tpu.dimension_semantics<parallel>], iteration_bounds = array<i64: 4>, scalar_prefetch = 0 : i64, scratch_operands = 0 : i64, tpu.core_type = #tpu.core_type<tc>, window_params = [{transform_indices = @transform_0, window_bounds = array<i64: 16, 8>}, {pipeline_mode = #tpu.pipeline_mode<synchronous>, transform_indices = @transform_1, window_bounds = array<i64: 8, 128>}, {pipeline_mode = #tpu.pipeline_mode<synchronous>, transform_indices = @transform_2, window_bounds = array<i64: 1, 128>}, {pipeline_mode = #tpu.pipeline_mode<synchronous>, transform_indices = @transform_3, window_bounds = array<i64: 128, 4>}, {pipeline_mode = #tpu.pipeline_mode<synchronous>, transform_indices = @transform_4, window_bounds = array<i64: 1, 4>}, {transform_indices = @transform_5, window_bounds = array<i64: 16, 4>}]} {
    %c0 = arith.constant 0 : index
    %c0_0 = arith.constant 0 : index
    %0 = vector.load %arg1[%c0, %c0_0] : memref<16x8xf32, #tpu.memory_space<vmem>>, vector<16x8xf32>
    %c0_1 = arith.constant 0 : index
    %c0_2 = arith.constant 0 : index
    %1 = vector.load %arg2[%c0_1, %c0_2] : memref<8x128xf32, #tpu.memory_space<vmem>>, vector<8x128xf32>
    %cst = arith.constant dense<0.000000e+00> : vector<16x128xf32>
    %2 = tpu.matmul %0, %1, %cst {dimension_numbers = #tpu.dot_dimension_numbers<[1], [0], [0], [1], [0, 0, 1, 1], [], []>} : vector<16x8xf32>, vector<8x128xf32>, vector<16x128xf32> -> vector<16x128xf32>
    %c0_3 = arith.constant 0 : index
    %c0_4 = arith.constant 0 : index
    %3 = vector.load %arg3[%c0_3, %c0_4] : memref<1x128xf32, #tpu.memory_space<vmem>>, vector<1x128xf32>
    %4 = vector.broadcast %3 : vector<1x128xf32> to vector<16x128xf32>
    %5 = arith.addf %2, %4 : vector<16x128xf32>
    %6 = math.tanh %5 : vector<16x128xf32>
    %c0_5 = arith.constant 0 : index
    %c0_6 = arith.constant 0 : index
    %7 = vector.load %arg4[%c0_5, %c0_6] : memref<128x4xf32, #tpu.memory_space<vmem>>, vector<128x4xf32>
    %cst_7 = arith.constant dense<0.000000e+00> : vector<16x4xf32>
    %8 = tpu.matmul %6, %7, %cst_7 {dimension_numbers = #tpu.dot_dimension_numbers<[1], [0], [0], [1], [0, 0, 1, 1], [], []>} : vector<16x128xf32>, vector<128x4xf32>, vector<16x4xf32> -> vector<16x4xf32>
    %c0_8 = arith.constant 0 : index
    %c0_9 = arith.constant 0 : index
    %9 = vector.load %arg5[%c0_8, %c0_9] : memref<1x4xf32, #tpu.memory_space<vmem>>, vector<1x4xf32>
    %10 = vector.broadcast %9 : vector<1x4xf32> to vector<16x4xf32>
    %11 = arith.addf %8, %10 : vector<16x4xf32>
    %c0_10 = arith.constant 0 : index
    %c0_11 = arith.constant 0 : index
    %12 = vector.load %arg6[%c0_10, %c0_11] : memref<16x4xf32, #tpu.memory_space<vmem>>, vector<16x4xf32>
    tpu.vector_store %arg6[%c0_10, %c0_11], %11 {strides = array<i32>} : memref<16x4xf32, #tpu.memory_space<vmem>>, vector<16x4xf32>,
    return
  }
  func.func @transform_0(%arg0: i32) -> (i32, i32) {
    %c0_i32 = arith.constant 0 : i32
    %c0_i32_0 = arith.constant 0 : i32
    return %arg0, %c0_i32 : i32, i32
  }
  func.func @transform_1(%arg0: i32) -> (i32, i32) {
    %c0_i32 = arith.constant 0 : i32
    %c0_i32_0 = arith.constant 0 : i32
    %c0_i32_1 = arith.constant 0 : i32
    return %c0_i32, %c0_i32_0 : i32, i32
  }
  func.func @transform_2(%arg0: i32) -> (i32, i32) {
    %c0_i32 = arith.constant 0 : i32
    %c0_i32_0 = arith.constant 0 : i32
    %c0_i32_1 = arith.constant 0 : i32
    return %c0_i32, %c0_i32_0 : i32, i32
  }
  func.func @transform_3(%arg0: i32) -> (i32, i32) {
    %c0_i32 = arith.constant 0 : i32
    %c0_i32_0 = arith.constant 0 : i32
    %c0_i32_1 = arith.constant 0 : i32
    return %c0_i32, %c0_i32_0 : i32, i32
  }
  func.func @transform_4(%arg0: i32) -> (i32, i32) {
    %c0_i32 = arith.constant 0 : i32
    %c0_i32_0 = arith.constant 0 : i32
    %c0_i32_1 = arith.constant 0 : i32
    return %c0_i32, %c0_i32_0 : i32, i32
  }
  func.func @transform_5(%arg0: i32) -> (i32, i32) {
    %c0_i32 = arith.constant 0 : i32
    %c0_i32_0 = arith.constant 0 : i32
    return %arg0, %c0_i32 : i32, i32
  }
}

</mosaic_0001>

<bundles_post_ra>
// kernel: fno_layer.8
= control target key start
LH: loop header
LB: loop body
LE: loop exit
PB: predicated region body
PF: predicated region fallthrough
CT: control target
= control target key end

     0   :  { %s610_s18 = smov 0   ;;  %s691_s0 = inlined_call_operand.vmem [shape: f32[60,4], index: 0, kind: input, shape index: {}]   ;;  %s692_s1 = inlined_call_operand.vmem [shape: f32[4,128], index: 1, kind: input, shape index: {}]   ;;  %s693_s2 = inlined_call_operand.vmem [shape: f32[1,128], index: 2, kind: input, shape index: {}]   ;;  %s694_s3 = inlined_call_operand.vmem [shape: f32[128,8], index: 3, kind: input, shape index: {}]   ;;  %s695_s4 = inlined_call_operand.vmem [shape: f32[1,8], index: 4, kind: input, shape index: {}]   ;;  %s696_s5 = inlined_call_operand.vmem [shape: f32[60,8], index: 5, kind: output, shape index: {}]  }
   0x1 LB: > { %s483_s19 = sadd.s32 4294967295, %s578_s18   ;;  %p487_p0 = scmp.ge.s32.totalorder %s578_s18, 1  ;;  %s578_s18 = sphi %s610_s18, %s15_s18  }
   0x2   : > { %p188_p1 = scmp.lt.s32.totalorder %s578_s18, 5 }
   0x4   : > { %p189_p2 = pnand %p487_p0, %p188_p1 }
   0x5   : > { %s488_s22 = sshll.u32 (!%p189_p2), %s483_s19, 1 }
   0x6   : > { %192 = sbr.rel (%p189_p2) target bundleno = 426 (0x1aa), region = 40  ;;  %p217_p3 = scmp.lt.s32.totalorder (!%p189_p2), %s488_s22, 7 }
   0xb   : > { %v230_v0 = vld [vmem:[%s692_s1] sm:$0xf]  ;;  %vm245_vm0 = vcmask 1043456   ;;  %v341_v1 = vld [vmem:[%s694_s3 + $0x78] sm:$0xff]  ;;  %v340_v2 = vld [vmem:[%s694_s3 + $0x70] sm:$0xff]  ;;  %s698_s22 = smov (!%p217_p3, %s488_s22), 7 }
   0xc   : > { %520 = vmatprep.subr.msk.mxu0 %vm245_vm0, %v230_v0  ;;  %525 = vmatprep.subr.mxu1 %v341_v1  ;;  %v339_v3 = vld [vmem:[%s694_s3 + $0x68] sm:$0xff]  ;;  %v338_v4 = vld [vmem:[%s694_s3 + $0x60] sm:$0xff]  ;;  %s489_s6 = sshll.u32 %s698_s22, 3  ;;  %vm238_vm1 = vcmask 31744   ;;  %v337_v5 = vld [vmem:[%s694_s3 + $0x58] sm:$0xff]  ;;  %vm424_vm2 = vcmask 64512  }
   0xd   : > { %521 = vmatpush3.msk.msra.mxu0 %vm245_vm0, %v230_v0  ;;  %526 = vmatpush3.msra.mxu1 %v341_v1  ;;  %s220_s9 = scalar_lea.vmem %s691_s0, %s489_s6  ;;  %v336_v8 = vld [vmem:[%s694_s3 + $0x50] sm:$0xff]  ;;  %v335_v9 = vld [vmem:[%s694_s3 + $0x48] sm:$0xff]  ;;  %v334_v10 = vld [vmem:[%s694_s3 + $0x40] sm:$0xff]  ;;  %s226_s19 = scalar_lea.vmem %s696_s5, %s489_s6 }
   0xe   : > { %527 = vmatprep.subr.mxu1 %v340_v2  ;;  %v228_v6 = vld [vmem:[%s220_s9] sm:$0xff]  ;;  %v229_v7 = vld [vmem:[%s220_s9 + $0x8] sm:$0xff]  ;;  %v333_v11 = vld [vmem:[%s694_s3 + $0x38] sm:$0xff] }
   0xf   : > { %528 = vmatpush3.msra.mxu1 %v340_v2  ;;  %522 = vmatprep.mubr.msk.f32.mxu0 %vm238_vm1, %v228_v6  ;;  %v332_v12 = vld [vmem:[%s694_s3 + $0x30] sm:$0xff]  ;;  %v331_v13 = vld [vmem:[%s694_s3 + $0x28] sm:$0xff]  ;;  %v330_v14 = vld [vmem:[%s694_s3 + $0x20] sm:$0xff] }
  0x10   : > { %529 = vmatprep.subr.mxu1 %v339_v3  ;;  %523 = vmatmul.mubr.msk.f32.vlgmr.msra.gmra.mxu0 %vm238_vm1, %v229_v7  ;;  %v329_v15 = vld [vmem:[%s694_s3 + $0x18] sm:$0xff]  ;;  %v328_v16 = vld [vmem:[%s694_s3 + $0x10] sm:$0xff]  ;;  %v327_v17 = vld [vmem:[%s694_s3 + $0x8] sm:$0xff] }
  0x11   : > { %530 = vmatpush3.msra.mxu1 %v339_v3  ;;  %v326_v18 = vld [vmem:[%s694_s3] sm:$0xff] }
  0x12   : > { %531 = vmatprep.subr.mxu1 %v338_v4  ;;  %v492_v19 = vld [vmem:[%s693_s2] ss:$0 sm:$0xff] }
  0x13   : > { %532 = vmatpush3.msra.mxu1 %v338_v4  ;;  %v496_v27 = vld [vmem:[%s695_s4] ss:$0 sm:$0xff] }
  0x14   : > { %533 = vmatprep.subr.mxu1 %v337_v5 }
  0x15   : > { %534 = vmatpush3.msra.mxu1 %v337_v5 }
  0x16   : > { %535 = vmatprep.subr.mxu1 %v336_v8 }
  0x17   : > { %536 = vmatpush3.msra.mxu1 %v336_v8 }
  0x18   : > { %537 = vmatprep.subr.mxu1 %v335_v9 }
  0x19   : > { %538 = vmatpush3.msra.mxu1 %v335_v9 }
  0x1a   : > { %539 = vmatprep.subr.mxu1 %v334_v10 }
  0x1b   : > { %540 = vmatpush3.msra.mxu1 %v334_v10 }
  0x1c   : > { %541 = vmatprep.subr.mxu1 %v333_v11 }
  0x1d   : > { %542 = vmatpush3.msra.mxu1 %v333_v11 }
  0x1e   : > { %543 = vmatprep.subr.mxu1 %v332_v12 }
  0x1f   : > { %544 = vmatpush3.msra.mxu1 %v332_v12 }
  0x20   : > { %545 = vmatprep.subr.mxu1 %v331_v13 }
  0x21   : > { %546 = vmatpush3.msra.mxu1 %v331_v13 }
  0x22   : > { %547 = vmatprep.subr.mxu1 %v330_v14 }
  0x23   : > { %548 = vmatpush3.msra.mxu1 %v330_v14 }
  0x24   : > { %549 = vmatprep.subr.mxu1 %v329_v15 }
  0x25   : > { %550 = vmatpush3.msra.mxu1 %v329_v15 }
  0x26   : > { %551 = vmatprep.subr.mxu1 %v328_v16 }
  0x27   : > { %552 = vmatpush3.msra.mxu1 %v328_v16 }
  0x28   : > { %553 = vmatprep.subr.mxu1 %v327_v17 }
  0x29   : > { %554 = vmatpush3.msra.mxu1 %v327_v17 }
  0x2a   : > { %555 = vmatprep.subr.mxu1 %v326_v18 }
  0x2b   : > { %556 = vmatpush3.msra.mxu1 %v326_v18 }
  0xd0   : > { %v524_v20 = vpop.f32.mrf.mxu0 }
  0xd1   : > { %v321_v21 = vadd.f32 %v524_v20, %v492_v19 }
  0xd2   : > { %v315_v22 = vpop.f32.mrf.mxu0 }
  0xd3   : > { %v316_v23 = vadd.f32 %v492_v19, %v315_v22 }
  0xd5   : > { %568 = vtanh.f32 %v316_v23 }
  0xd6   : > { %570 = vtanh.f32 %v321_v21 }
  0xe2   : > { %v569_v24 = vpop.eup %568 }
  0xe3   : > { %v571_v25 = vpop.eup %570  ;;  %557 = vmatprep.mubr.f32.mxu1 %v569_v24 }
  0xe4   : > { %558 = vmatmul.mubr.f32.vlgmr.msra.gmra.mxu1 %v571_v25 }
 0x1a4   : > { %v559_v26 = vpop.f32.mrf.mxu1 }
 0x1a5   : > { %v421_v30 = vadd.f32 %v559_v26, %v496_v27 }
 0x1a6   : > { %v415_v28 = vpop.f32.mrf.mxu1 }
 0x1a7   : > { %v416_v29 = vadd.f32 %v496_v27, %v415_v28  ;;  %426 = vst.msk [vmem:[%s226_s19 + $0x8] sm:$0xff] %vm424_vm2, %v421_v30 }
 0x1a9   : > { %425 = vst.msk [vmem:[%s226_s19] sm:$0xff] %vm424_vm2, %v416_v29 }
 0x1aa PF: > { %s15_s18 = sadd.s32 1, %s578_s18  }
 0x1ab   : > { %p12_p4 = scmp.ge.s32.totalorder %s15_s18, 6  }
 0x1ad   :  { %14 = sbr.rel (!%p12_p4) target bundleno = 1 (0x1), region = 70 }

// kernel: fno_layer.9
= control target key start
LH: loop header
LB: loop body
LE: loop exit
PB: predicated region body
PF: predicated region fallthrough
CT: control target
= control target key end

     0   :  { %s347_s9 = smov 0   ;;  %s370_s0 = inlined_call_operand.vmem [shape: f32[60,16], index: 0, kind: input, shape index: {}]   ;;  %s371_s1 = inlined_call_operand.vmem [shape: f32[16,10], index: 1, kind: input, shape index: {}]   ;;  %s372_s2 = inlined_call_operand.vmem [shape: f32[60,10], index: 2, kind: output, shape index: {}]  }
   0x1 LB: > { %s292_s10 = sadd.s32 4294967295, %s330_s9   ;;  %p296_p0 = scmp.ge.s32.totalorder %s330_s9, 1  ;;  %s330_s9 = sphi %s347_s9, %s12_s9  }
   0x2   : > { %p113_p1 = scmp.lt.s32.totalorder %s330_s9, 5 }
   0x4   : > { %p114_p2 = pnand %p296_p0, %p113_p1 }
   0x5   : > { %s297_s15 = sshll.u32 (!%p114_p2), %s292_s10, 1 }
   0x6   : > { %117 = sbr.rel (%p114_p2) target bundleno = 212 (0xd4), region = 28  ;;  %p136_p3 = scmp.lt.s32.totalorder (!%p114_p2), %s297_s15, 7 }
   0xb   : > { %v150_v0 = vld [vmem:[%s371_s1 + $0x8] sm:$0xff]  ;;  %v149_v1 = vld [vmem:[%s371_s1] sm:$0xff]  ;;  %s374_s15 = smov (!%p136_p3, %s297_s15), 7  ;;  %vm151_vm0 = vcmask 130048   ;;  %vm233_vm1 = vcmask 80896  }
   0xc   : > { %309 = vmatprep.subr.mxu0 %v150_v0  ;;  %s298_s16 = sshll.u32 %s374_s15, 3 }
   0xd   : > { %310 = vmatpush3.msra.mxu0 %v150_v0  ;;  %s139_s19 = scalar_lea.vmem %s370_s0, %s298_s16  ;;  %s145_s22 = scalar_lea.vmem %s372_s2, %s298_s16 }
   0xe   : > { %311 = vmatprep.subr.mxu0 %v149_v1  ;;  %v147_v2 = vld [vmem:[%s139_s19] sm:$0xff]  ;;  %v148_v3 = vld [vmem:[%s139_s19 + $0x8] sm:$0xff] }
   0xf   : > { %312 = vmatpush3.msra.mxu0 %v149_v1  ;;  %313 = vmatprep.mubr.msk.f32.mxu0 %vm151_vm0, %v147_v2 }
  0x10   : > { %314 = vmatmul.mubr.msk.f32.vlgmr.msra.gmra.mxu0 %vm151_vm0, %v148_v3 }
  0xd0   : > { %v315_v4 = vpop.f32.mrf.mxu0 }
  0xd1   : > { %235 = vst.msk [vmem:[%s145_s22 + $0x8] sm:$0xff] %vm233_vm1, %v315_v4 }
  0xd2   : > { %v224_v5 = vpop.f32.mrf.mxu0 }
  0xd3   : > { %234 = vst.msk [vmem:[%s145_s22] sm:$0xff] %vm233_vm1, %v224_v5 }
  0xd4 PF: > { %s12_s9 = sadd.s32 1, %s330_s9  }
  0xd5   : > { %p9_p4 = scmp.ge.s32.totalorder %s12_s9, 6  }
  0xd7   :  { %11 = sbr.rel (!%p9_p4) target bundleno = 1 (0x1), region = 58 }

// kernel: reverse.7
= control target key start
LH: loop header
LB: loop body
LE: loop exit
PB: predicated region body
PF: predicated region fallthrough
CT: control target
= control target key end

     0   :  { %v58_v2 = vld [vmem:[#allocation1 + $0x8] sm:$0xf]  ;;  %v65_v3 = vld [vmem:[#allocation1] sm:$0xf]  ;;  %v75_v6 = vlaneseq  ;;  %s185_s0 = inlined_call_operand.vmem [shape: f32[2,30,3], index: 0, kind: input, shape index: {}]   ;;  %s186_s1 = inlined_call_operand.vmem [shape: f32[2,30,3], index: 1, kind: output, shape index: {}]  }
   0x1   :  { %v19_v0 = vld [vmem:[%s185_s0] sm:$0xf]  ;;  %v21_v1 = vld [vmem:[%s185_s0 + $0x4] sm:$0xf]  ;;  %60 = vst [vmem:[#allocation0 + $0x10] sm:$0xf] %v58_v2 }
   0x2   :  { %20 = vst [vmem:[#allocation1 + $0x4] sm:$0xf] %v19_v0  ;;  %22 = vst [vmem:[#allocation1 + $0xc] sm:$0xf] %v21_v1  ;;  %v76_v11 = vshrl.u32 %v75_v6, 7 }
   0x3   :  { %66 = vst [vmem:[#allocation0] sm:$0xf] %v65_v3 }
   0x4   :  { %vm77_vm0 = vcmp.lt.s32.totalorder %v76_v11, 3 }
   0x8   :  { %v82_v7 = vld [vmem:[#allocation0 + $0x17] ss:$-1 sm:$0xff] }
   0x9   :  { %v53_v4 = vld [vmem:[#allocation1 + $0xc] sm:$0xf]  ;;  %v62_v5 = vld [vmem:[#allocation1 + $0x4] sm:$0xf]  ;;  %v83_v9 = vrot.slane %v82_v7, 5 }
   0xa   :  { %55 = vst [vmem:[#allocation0 + $0x18] sm:$0xf] %v53_v4  ;;  %64 = vst [vmem:[#allocation0 + $0x8] sm:$0xf] %v62_v5  ;;  %v68_v8 = vld [vmem:[#allocation0 + $0x7] ss:$-1 sm:$0xff] }
   0xb   :  { %v69_v10 = vrot.slane %v68_v8, 5  ;;  %84 = vst [vmem:[#allocation2 + $0x8] sm:$0xff] %v83_v9 }
   0xd   :  { %70 = vst [vmem:[#allocation2] sm:$0xff] %v69_v10 }
  0x11   :  { %v73_v12 = vld [vmem:[#allocation0 + $0xf] ss:$-1 sm:$0xff]  ;;  %v87_v13 = vld [vmem:[#allocation0 + $0x1f] ss:$-1 sm:$0xff] }
  0x12   :  { %v74_v14 = vrot.slane %v73_v12, 5  ;;  %v88_v15 = vrot.slane %v87_v13, 5 }
  0x14   :  { %78 = vst.msk [vmem:[#allocation2] sm:$0xff] %vm77_vm0, %v74_v14  ;;  %92 = vst.msk [vmem:[#allocation2 + $0x8] sm:$0xff] %vm77_vm0, %v88_v15 }
  0x1b   :  { %v97_v16 = vld [vmem:[#allocation2] sm:$0xf]  ;;  %v102_v17 = vld [vmem:[#allocation2 + $0x8] sm:$0xf] }
  0x1c   :  { %100 = vst [vmem:[#allocation3] sm:$0xf] %v97_v16  ;;  %106 = vst [vmem:[#allocation3 + $0x4] sm:$0xf] %v102_v17 }
  0x23   :  { %v123_v18 = vld [vmem:[#allocation3] sm:$0xff]  }
  0x24   :  { %124 = vst [vmem:[%s186_s1] sm:$0xff] %v123_v18  }

// kernel: fno_layer.10
= control target key start
LH: loop header
LB: loop body
LE: loop exit
PB: predicated region body
PF: predicated region fallthrough
CT: control target
= control target key end

     0   :  { %s536_s15 = smov 0   ;;  %s587_s0 = inlined_call_operand.vmem [shape: f32[60,8], index: 0, kind: input, shape index: {}]   ;;  %s588_s1 = inlined_call_operand.vmem [shape: f32[8,8], index: 1, kind: input, shape index: {}]   ;;  %s589_s2 = inlined_call_operand.vmem [shape: f32[1,8], index: 2, kind: input, shape index: {}]   ;;  %s590_s3 = inlined_call_operand.vmem [shape: f32[60,8], index: 3, kind: input, shape index: {}]   ;;  %s591_s4 = inlined_call_operand.vmem [shape: f32[60,8], index: 4, kind: output, shape index: {}]  }
   0x1 LB: > { %s463_s16 = sadd.s32 4294967295, %s509_s15   ;;  %p467_p0 = scmp.ge.s32.totalorder %s509_s15, 1  ;;  %s509_s15 = sphi %s536_s15, %s14_s15  }
   0x2   : > { %p174_p1 = scmp.lt.s32.totalorder %s509_s15, 5 }
   0x4   : > { %p175_p2 = pnand %p467_p0, %p174_p1 }
   0x5   : > { %s468_s19 = sshll.u32 (!%p175_p2), %s463_s16, 1 }
   0x6   : > { %178 = sbr.rel (%p175_p2) target bundleno = 303 (0x12f), region = 36  ;;  %p206_p3 = scmp.lt.s32.totalorder (!%p175_p2), %s468_s19, 7 }
   0xb   : > { %v225_v0 = vld [vmem:[%s588_s1] sm:$0xff]  ;;  %s593_s19 = smov (!%p206_p3, %s468_s19), 7  ;;  %vm233_vm0 = vcmask 64512  }
   0xc   : > { %482 = vmatprep.subr.mxu0 %v225_v0  ;;  %s547_s20 = sshll.u32 %s593_s19, 3  ;;  %v474_v3 = vld [vmem:[%s589_s2] ss:$0 sm:$0xff] }
   0xd   : > { %483 = vmatpush3.msra.mxu0 %v225_v0  ;;  %s209_s23 = scalar_lea.vmem %s587_s0, %s547_s20  ;;  %s215_s26 = scalar_lea.vmem %s590_s3, %s547_s20 }
   0xe   : > { %v223_v1 = vld [vmem:[%s209_s23] sm:$0xff]  ;;  %v224_v2 = vld [vmem:[%s209_s23 + $0x8] sm:$0xff]  ;;  %s221_s5 = scalar_lea.vmem %s591_s4, %s547_s20 }
   0xf   : > { %484 = vmatprep.mubr.msk.f32.mxu0 %vm233_vm0, %v223_v1  ;;  %v316_v5 = vld [vmem:[%s215_s26 + $0x8] sm:$0xff]  ;;  %v315_v8 = vld [vmem:[%s215_s26] sm:$0xff] }
  0x10   : > { %485 = vmatmul.mubr.msk.f32.vlgmr.msra.gmra.mxu0 %vm233_vm0, %v224_v2 }
  0xd0   : > { %v486_v4 = vpop.f32.mrf.mxu0 }
  0xd1   : > { %v312_v6 = vadd.f32 %v486_v4, %v474_v3 }
  0xd2   : > { %v306_v7 = vpop.f32.mrf.mxu0 }
  0xd3   : > { %v562_v9 = vadd.f32 %v316_v5, %v312_v6  ;;  %v307_v10 = vadd.f32 %v474_v3, %v306_v7 }
  0xd5   : > { %v565_v11 = vmul.f32 0.70710677, %v562_v9  ;;  %v567_v12 = vadd.f32 %v315_v8, %v307_v10 }
  0xd7   : > { %v324_v13 = vand.u32 2147483647, %v565_v11  ;;  %v571_v14 = vmul.f32 0.70710677, %v567_v12  ;;  %vm384_vm1 = vcmp.ge.f32.partialorder %v565_v11, 0.0 }
  0xd9   : > { %v326_v15 = vmul.f32 0.5, %v324_v13  ;;  %v323_v16 = vand.u32 2147483647, %v571_v14  ;;  %v370_v52 = vsub.f32 0.0, %v324_v13  ;;  %vm383_vm2 = vcmp.ge.f32.partialorder %v571_v14, 0.0 }
  0xdb   : > { %v328_v17 = vadd.f32 1.0, %v326_v15  ;;  %v325_v18 = vmul.f32 0.5, %v323_v16  ;;  %v369_v56 = vsub.f32 0.0, %v323_v16  ;;  %v372_v58 = vmul.f32 %v370_v52, %v324_v13 }
  0xdc   : > { %v320_v15 = vmul.f32 0.5, %v562_v9 }
  0xdd   : > { %495 = vrcp.f32 %v328_v17  ;;  %v327_v19 = vadd.f32 1.0, %v325_v18  ;;  %v371_v62 = vmul.f32 %v369_v56, %v323_v16 }
  0xdf   : > { %497 = vrcp.f32 %v327_v19  ;;  %v319_v19 = vmul.f32 0.5, %v567_v12 }
  0xea   : > { %v496_v20 = vpop.eup %495 }
  0xeb   : > { %v334_v21 = vmul.f32 0.17087276, %v496_v20 }
  0xec   : > { %v498_v22 = vpop.eup %497 }
  0xed   : > { %v336_v23 = vadd.f32 -0.82215226, %v334_v21  ;;  %v333_v24 = vmul.f32 0.17087276, %v498_v22 }
  0xef   : > { %v338_v25 = vmul.f32 %v496_v20, %v336_v23  ;;  %v335_v26 = vadd.f32 -0.82215226, %v333_v24 }
  0xf1   : > { %v340_v27 = vadd.f32 1.4885159, %v338_v25  ;;  %v337_v28 = vmul.f32 %v498_v22, %v335_v26 }
  0xf3   : > { %v342_v29 = vmul.f32 %v496_v20, %v340_v27  ;;  %v339_v30 = vadd.f32 1.4885159, %v337_v28 }
  0xf5   : > { %v344_v31 = vadd.f32 -1.135204, %v342_v29  ;;  %v341_v32 = vmul.f32 %v498_v22, %v339_v30 }
  0xf7   : > { %v346_v33 = vmul.f32 %v496_v20, %v344_v31  ;;  %v343_v34 = vadd.f32 -1.135204, %v341_v32 }
  0xf9   : > { %v348_v35 = vadd.f32 0.27886808, %v346_v33  ;;  %v345_v36 = vmul.f32 %v498_v22, %v343_v34 }
  0xfb   : > { %v350_v37 = vmul.f32 %v496_v20, %v348_v35  ;;  %v347_v38 = vadd.f32 0.27886808, %v345_v36 }
  0xfd   : > { %v352_v39 = vadd.f32 -0.18628806, %v350_v37  ;;  %v349_v40 = vmul.f32 %v498_v22, %v347_v38 }
  0xff   : > { %v354_v41 = vmul.f32 %v496_v20, %v352_v39  ;;  %v351_v42 = vadd.f32 -0.18628806, %v349_v40 }
 0x101   : > { %v356_v43 = vadd.f32 0.09678418, %v354_v41  ;;  %v353_v44 = vmul.f32 %v498_v22, %v351_v42 }
 0x103   : > { %v358_v45 = vmul.f32 %v496_v20, %v356_v43  ;;  %v355_v46 = vadd.f32 0.09678418, %v353_v44 }
 0x105   : > { %v360_v47 = vadd.f32 0.37409195, %v358_v45  ;;  %v357_v48 = vmul.f32 %v498_v22, %v355_v46 }
 0x107   : > { %v362_v49 = vmul.f32 %v496_v20, %v360_v47  ;;  %v359_v50 = vadd.f32 0.37409195, %v357_v48 }
 0x109   : > { %v364_v51 = vadd.f32 1.0000237, %v362_v49  ;;  %v361_v53 = vmul.f32 %v498_v22, %v359_v50 }
 0x10b   : > { %v366_v54 = vmul.f32 %v496_v20, %v364_v51  ;;  %v363_v55 = vadd.f32 1.0000237, %v361_v53 }
 0x10d   : > { %v368_v57 = vadd.f32 -1.2655122, %v366_v54  ;;  %v365_v59 = vmul.f32 %v498_v22, %v363_v55 }
 0x10f   : > { %v374_v60 = vadd.f32 %v372_v58, %v368_v57  ;;  %v367_v61 = vadd.f32 -1.2655122, %v365_v59 }
 0x111   : > { %v377_v63 = vmul.f32 1.442695, %v374_v60  ;;  %v373_v0 = vadd.f32 %v371_v62, %v367_v61 }
 0x113   : > { %499 = vpow2.f32 %v377_v63  ;;  %v375_v1 = vmul.f32 1.442695, %v373_v0 }
 0x115   : > { %501 = vpow2.f32 %v375_v1 }
 0x120   : > { %v500_v2 = vpop.eup %499 }
 0x121   : > { %v380_v3 = vmul.f32 %v500_v2, %v496_v20 }
 0x122   : > { %v502_v4 = vpop.eup %501 }
 0x123   : > { %v382_v5 = vsub.f32 1.0, %v380_v3  ;;  %v379_v6 = vmul.f32 %v502_v4, %v498_v22 }
 0x125   : > { %v386_v7 = vsub.f32 0.0, %v382_v5  ;;  %v381_v8 = vsub.f32 1.0, %v379_v6 }
 0x127   : > { %v388_v10 = vsel %vm384_vm1, %v382_v5, %v386_v7  ;;  %v385_v13 = vsub.f32 0.0, %v381_v8 }
 0x128   : > { %v390_v16 = vadd.f32 1.0, %v388_v10 }
 0x129   : > { %v387_v17 = vsel %vm383_vm2, %v381_v8, %v385_v13 }
 0x12a   : > { %v392_v18 = vmul.f32 %v390_v16, %v320_v15  ;;  %v389_v20 = vadd.f32 1.0, %v387_v17 }
 0x12c   : > { %v391_v21 = vmul.f32 %v389_v20, %v319_v19  ;;  %394 = vst.msk [vmem:[%s221_s5 + $0x8] sm:$0xff] %vm233_vm0, %v392_v18 }
 0x12e   : > { %393 = vst.msk [vmem:[%s221_s5] sm:$0xff] %vm233_vm0, %v391_v21 }
 0x12f PF: > { %s14_s15 = sadd.s32 1, %s509_s15  }
 0x130   : > { %p11_p4 = scmp.ge.s32.totalorder %s14_s15, 6  }
 0x132   :  { %13 = sbr.rel (!%p11_p4) target bundleno = 1 (0x1), region = 69 }

// kernel: fno_layer.15
= control target key start
LH: loop header
LB: loop body
LE: loop exit
PB: predicated region body
PF: predicated region fallthrough
CT: control target
= control target key end

     0   :  { %s605_s18 = smov 0   ;;  %s686_s0 = inlined_call_operand.vmem [shape: f32[60,8], index: 0, kind: input, shape index: {}]   ;;  %s687_s1 = inlined_call_operand.vmem [shape: f32[8,128], index: 1, kind: input, shape index: {}]   ;;  %s688_s2 = inlined_call_operand.vmem [shape: f32[1,128], index: 2, kind: input, shape index: {}]   ;;  %s689_s3 = inlined_call_operand.vmem [shape: f32[128,4], index: 3, kind: input, shape index: {}]   ;;  %s690_s4 = inlined_call_operand.vmem [shape: f32[1,4], index: 4, kind: input, shape index: {}]   ;;  %s691_s5 = inlined_call_operand.vmem [shape: f32[60,4], index: 5, kind: output, shape index: {}]  }
   0x1 LB: > { %s479_s19 = sadd.s32 4294967295, %s573_s18   ;;  %p483_p0 = scmp.ge.s32.totalorder %s573_s18, 1  ;;  %s573_s18 = sphi %s605_s18, %s15_s18  }
   0x2   : > { %p188_p1 = scmp.lt.s32.totalorder %s573_s18, 5 }
   0x4   : > { %p189_p2 = pnand %p483_p0, %p188_p1 }
   0x5   : > { %s484_s22 = sshll.u32 (!%p189_p2), %s479_s19, 1 }
   0x6   : > { %192 = sbr.rel (%p189_p2) target bundleno = 426 (0x1aa), region = 40  ;;  %p217_p3 = scmp.lt.s32.totalorder (!%p189_p2), %s484_s22, 7 }
   0xb   : > { %v230_v0 = vld [vmem:[%s687_s1] sm:$0xff]  ;;  %v337_v1 = vld [vmem:[%s689_s3 + $0x78] sm:$0xff]  ;;  %v336_v2 = vld [vmem:[%s689_s3 + $0x70] sm:$0xff]  ;;  %s693_s22 = smov (!%p217_p3, %s484_s22), 7  ;;  %vm238_vm0 = vcmask 64512   ;;  %vm420_vm1 = vcmask 31744  }
   0xc   : > { %515 = vmatprep.subr.mxu0 %v230_v0  ;;  %520 = vmatprep.subr.mxu1 %v337_v1  ;;  %v335_v3 = vld [vmem:[%s689_s3 + $0x68] sm:$0xff]  ;;  %v334_v4 = vld [vmem:[%s689_s3 + $0x60] sm:$0xff]  ;;  %s485_s6 = sshll.u32 %s693_s22, 3  ;;  %v333_v5 = vld [vmem:[%s689_s3 + $0x58] sm:$0xff] }
   0xd   : > { %516 = vmatpush3.msra.mxu0 %v230_v0  ;;  %521 = vmatpush3.msra.mxu1 %v337_v1  ;;  %s220_s9 = scalar_lea.vmem %s686_s0, %s485_s6  ;;  %v332_v8 = vld [vmem:[%s689_s3 + $0x50] sm:$0xff]  ;;  %v331_v9 = vld [vmem:[%s689_s3 + $0x48] sm:$0xff]  ;;  %v330_v10 = vld [vmem:[%s689_s3 + $0x40] sm:$0xff]  ;;  %s226_s19 = scalar_lea.vmem %s691_s5, %s485_s6 }
   0xe   : > { %522 = vmatprep.subr.mxu1 %v336_v2  ;;  %v228_v6 = vld [vmem:[%s220_s9] sm:$0xff]  ;;  %v229_v7 = vld [vmem:[%s220_s9 + $0x8] sm:$0xff]  ;;  %v329_v11 = vld [vmem:[%s689_s3 + $0x38] sm:$0xff] }
   0xf   : > { %523 = vmatpush3.msra.mxu1 %v336_v2  ;;  %517 = vmatprep.mubr.msk.f32.mxu0 %vm238_vm0, %v228_v6  ;;  %v328_v12 = vld [vmem:[%s689_s3 + $0x30] sm:$0xff]  ;;  %v327_v13 = vld [vmem:[%s689_s3 + $0x28] sm:$0xff]  ;;  %v326_v14 = vld [vmem:[%s689_s3 + $0x20] sm:$0xff] }
  0x10   : > { %524 = vmatprep.subr.mxu1 %v335_v3  ;;  %518 = vmatmul.mubr.msk.f32.vlgmr.msra.gmra.mxu0 %vm238_vm0, %v229_v7  ;;  %v325_v15 = vld [vmem:[%s689_s3 + $0x18] sm:$0xff]  ;;  %v324_v16 = vld [vmem:[%s689_s3 + $0x10] sm:$0xff]  ;;  %v323_v17 = vld [vmem:[%s689_s3 + $0x8] sm:$0xff] }
  0x11   : > { %525 = vmatpush3.msra.mxu1 %v335_v3  ;;  %v322_v18 = vld [vmem:[%s689_s3] sm:$0xff] }
  0x12   : > { %526 = vmatprep.subr.mxu1 %v334_v4  ;;  %v488_v19 = vld [vmem:[%s688_s2] ss:$0 sm:$0xff] }
  0x13   : > { %527 = vmatpush3.msra.mxu1 %v334_v4  ;;  %v491_v27 = vld [vmem:[%s690_s4] ss:$0 sm:$0xff] }
  0x14   : > { %528 = vmatprep.subr.mxu1 %v333_v5 }
  0x15   : > { %529 = vmatpush3.msra.mxu1 %v333_v5 }
  0x16   : > { %530 = vmatprep.subr.mxu1 %v332_v8 }
  0x17   : > { %531 = vmatpush3.msra.mxu1 %v332_v8 }
  0x18   : > { %532 = vmatprep.subr.mxu1 %v331_v9 }
  0x19   : > { %533 = vmatpush3.msra.mxu1 %v331_v9 }
  0x1a   : > { %534 = vmatprep.subr.mxu1 %v330_v10 }
  0x1b   : > { %535 = vmatpush3.msra.mxu1 %v330_v10 }
  0x1c   : > { %536 = vmatprep.subr.mxu1 %v329_v11 }
  0x1d   : > { %537 = vmatpush3.msra.mxu1 %v329_v11 }
  0x1e   : > { %538 = vmatprep.subr.mxu1 %v328_v12 }
  0x1f   : > { %539 = vmatpush3.msra.mxu1 %v328_v12 }
  0x20   : > { %540 = vmatprep.subr.mxu1 %v327_v13 }
  0x21   : > { %541 = vmatpush3.msra.mxu1 %v327_v13 }
  0x22   : > { %542 = vmatprep.subr.mxu1 %v326_v14 }
  0x23   : > { %543 = vmatpush3.msra.mxu1 %v326_v14 }
  0x24   : > { %544 = vmatprep.subr.mxu1 %v325_v15 }
  0x25   : > { %545 = vmatpush3.msra.mxu1 %v325_v15 }
  0x26   : > { %546 = vmatprep.subr.mxu1 %v324_v16 }
  0x27   : > { %547 = vmatpush3.msra.mxu1 %v324_v16 }
  0x28   : > { %548 = vmatprep.subr.mxu1 %v323_v17 }
  0x29   : > { %549 = vmatpush3.msra.mxu1 %v323_v17 }
  0x2a   : > { %550 = vmatprep.subr.mxu1 %v322_v18 }
  0x2b   : > { %551 = vmatpush3.msra.mxu1 %v322_v18 }
  0xd0   : > { %v519_v20 = vpop.f32.mrf.mxu0 }
  0xd1   : > { %v317_v21 = vadd.f32 %v519_v20, %v488_v19 }
  0xd2   : > { %v311_v22 = vpop.f32.mrf.mxu0 }
  0xd3   : > { %v312_v23 = vadd.f32 %v488_v19, %v311_v22 }
  0xd5   : > { %563 = vtanh.f32 %v312_v23 }
  0xd6   : > { %565 = vtanh.f32 %v317_v21 }
  0xe2   : > { %v564_v24 = vpop.eup %563 }
  0xe3   : > { %v566_v25 = vpop.eup %565  ;;  %552 = vmatprep.mubr.f32.mxu1 %v564_v24 }
  0xe4   : > { %553 = vmatmul.mubr.f32.vlgmr.msra.gmra.mxu1 %v566_v25 }
 0x1a4   : > { %v554_v26 = vpop.f32.mrf.mxu1 }
 0x1a5   : > { %v417_v30 = vadd.f32 %v554_v26, %v491_v27 }
 0x1a6   : > { %v411_v28 = vpop.f32.mrf.mxu1 }
 0x1a7   : > { %v412_v29 = vadd.f32 %v491_v27, %v411_v28  ;;  %422 = vst.msk [vmem:[%s226_s19 + $0x8] sm:$0xff] %vm420_vm1, %v417_v30 }
 0x1a9   : > { %421 = vst.msk [vmem:[%s226_s19] sm:$0xff] %vm420_vm1, %v412_v29 }
 0x1aa PF: > { %s15_s18 = sadd.s32 1, %s573_s18  }
 0x1ab   : > { %p12_p4 = scmp.ge.s32.totalorder %s15_s18, 6  }
 0x1ad   :  { %14 = sbr.rel (!%p12_p4) target bundleno = 1 (0x1), region = 70 }

</bundles_post_ra>
